<compile_context>
chip_gen: v7x
topology: tpu7x:2x2x1
jax: 0.10.0
libtpu: 0.0.40
codegen_flags: <defaults>
</compile_context>

<pallas_src>
import jax
import jax.numpy as jnp
from jax.experimental import pallas as pl
from jax.experimental.pallas import tpu as pltpu


def _round_up(x, m):
    return ((x + m - 1) // m) * m


def _pad2(a, rows, cols):
    pr, pc = rows - a.shape[0], cols - a.shape[1]
    if pr == 0 and pc == 0:
        return a
    return jnp.pad(a, ((0, pr), (0, pc)))


def _device_kind():
    try:
        return jax.devices()[0].device_kind.lower()
    except Exception:
        return ""


def _vmem_budget_bytes():
    """~80% of physical VMEM; generation-aware fallback."""
    try:
        info = pltpu.get_tpu_info()
        cap = getattr(info, "vmem_capacity_bytes", None)
        if cap:
            return int(0.8 * cap)
    except Exception:
        pass
    # v7x: 64 MiB/TC physical -> 48 MiB; v5e/v6e: 128 MiB -> 100 MiB.
    return (48 << 20) if "v7" in _device_kind() else (100 << 20)


def _mlp_encoder_kernel(x_ref, w1_ref, b1_ref, w2_ref, b2_ref, w3_ref, b3_ref,
                        o_ref):
    """Fused 3-layer MLP: relu(relu(relu(x@W1+b1)@W2+b2)@W3+b3)."""
    cdt = w1_ref.dtype  # MXU input dtype (bf16 by default); accumulation is f32.

    x = x_ref[...].astype(cdt)  # in-kernel cast (VPU, free) — no wrapper copy.
    y1 = jnp.dot(x, w1_ref[...], preferred_element_type=jnp.float32)
    y1 = jnp.maximum(y1 + b1_ref[...], 0.0).astype(cdt)

    y2 = jnp.dot(y1, w2_ref[...], preferred_element_type=jnp.float32)
    y2 = jnp.maximum(y2 + b2_ref[...], 0.0).astype(cdt)

    y3 = jnp.dot(y2, w3_ref[...], preferred_element_type=jnp.float32)
    y3 = jnp.maximum(y3 + b3_ref[...], 0.0)

    o_ref[...] = y3.astype(o_ref.dtype)


def prepare_mlp_encoder_params(w1, b1, w2, b2, w3, b3, *,
                               compute_dtype=jnp.bfloat16, feature_align=None):
    """Pad + cast the weights ONCE; reuse the result across mlp_encoder calls.

    w1: (in_size, hidden), w2/w3: (hidden, hidden), b*: (1, hidden) or (hidden,)
    Zero padding of the hidden dim is exact (padded cols/rows are 0, bias pad
    is 0, relu(0)=0), so padded units never contribute to real outputs.
    """
    in_size, hidden = w1.shape
    if feature_align is None:
        # v6e/v7x MXU is 2x256x256 -> align large hidden to 256; v5e is 128-wide.
        feature_align = 256 if ("v5" not in _device_kind() and hidden > 128) else 128
    hid_p = _round_up(hidden, feature_align)
    cdt = jnp.dtype(compute_dtype)

    w1p = _pad2(w1, in_size, hid_p).astype(cdt)
    w2p = _pad2(w2, hid_p, hid_p).astype(cdt)
    w3p = _pad2(w3, hid_p, hid_p).astype(cdt)
    b1p = _pad2(jnp.reshape(b1, (1, -1)), 1, hid_p).astype(jnp.float32)
    b2p = _pad2(jnp.reshape(b2, (1, -1)), 1, hid_p).astype(jnp.float32)
    b3p = _pad2(jnp.reshape(b3, (1, -1)), 1, hid_p).astype(jnp.float32)
    return (w1p, b1p, w2p, b2p, w3p, b3p)


def mlp_encoder(x, params, hidden=None, *, block_b=256, out_dtype=None):
    """Fused MLP encoder forward.

    Args:
      x:       (batch, in_size) float array — NOT padded by the caller.
      params:  output of prepare_mlp_encoder_params (padded / casted weights).
      hidden:  original hidden size; output is trimmed to it.  Pass None to
               receive the lane-padded (batch, hid_p) result and avoid the
               post-kernel slice copy.
      out_dtype: output dtype (default: x.dtype).  bf16 halves writeback bytes.
    Returns:
      (batch, hidden) array (or (batch, hid_p) when hidden is None).
    """
    w1p, b1p, w2p, b2p, w3p, b3p = params
    batch, in_size = x.shape
    assert w1p.shape[0] == in_size, "params/in_size mismatch"
    hid_p = w1p.shape[1]
    out_dtype = jnp.dtype(out_dtype or x.dtype)
    cdt = w1p.dtype
    kind = _device_kind()

    # Batch tile: multiple of 8 sublanes.  Split into >=2 "parallel" grid steps
    # only on 2-TensorCore chips (v7x); on v5e/v6e one big tile avoids the
    # ~0.35us/step overhead and keeps the MXU M dimension full.
    block_b = max(8, min(block_b, _round_up(batch, 8)))
    if "v7" in kind and batch >= 256 and pl.cdiv(batch, block_b) < 2:
        block_b = _round_up(pl.cdiv(batch, 2), 128)
    grid = (pl.cdiv(batch, block_b),)

    # VMEM footprint: single-buffered resident weights/biases + double-buffered
    # x / out tiles + f32 intermediates; 2x headroom, capped by physical budget.
    w_bytes = ((in_size * hid_p + 2 * hid_p * hid_p) * cdt.itemsize
               + 3 * hid_p * 4)
    vmem_est = (2 * block_b * in_size * x.dtype.itemsize
                + 2 * block_b * hid_p * out_dtype.itemsize
                + w_bytes
                + 3 * block_b * hid_p * 4)
    vmem_limit = int(min(max(2 * vmem_est, 16 << 20), _vmem_budget_bytes()))

    cost = pl.CostEstimate(
        flops=int(2 * batch * (in_size * hid_p + 2 * hid_p * hid_p)),
        transcendentals=0,
        bytes_accessed=int(batch * in_size * x.dtype.itemsize + w_bytes
                           + batch * hid_p * out_dtype.itemsize),
    )

    def build(weight_pipeline_mode):
        # Weight/bias blocks have a constant index_map -> fetched once; single
        # buffering (Buffered(1)) halves their VMEM allocation.
        wkw = ({"pipeline_mode": weight_pipeline_mode}
               if weight_pipeline_mode is not None else {})
        return pl.pallas_call(
            _mlp_encoder_kernel,
            out_shape=jax.ShapeDtypeStruct((batch, hid_p), out_dtype),
            grid_spec=pltpu.PrefetchScalarGridSpec(
                num_scalar_prefetch=0,
                grid=grid,
                in_specs=[
                    # x tiled over batch; last dim equals the full (unpadded)
                    # in_size, which satisfies the block-shape rule.
                    pl.BlockSpec((block_b, in_size), lambda i: (i, 0)),
                    pl.BlockSpec((in_size, hid_p), lambda i: (0, 0), **wkw),
                    pl.BlockSpec((1, hid_p), lambda i: (0, 0), **wkw),
                    pl.BlockSpec((hid_p, hid_p), lambda i: (0, 0), **wkw),
                    pl.BlockSpec((1, hid_p), lambda i: (0, 0), **wkw),
                    pl.BlockSpec((hid_p, hid_p), lambda i: (0, 0), **wkw),
                    pl.BlockSpec((1, hid_p), lambda i: (0, 0), **wkw),
                ],
                out_specs=pl.BlockSpec((block_b, hid_p), lambda i: (i, 0)),
            ),
            compiler_params=pltpu.CompilerParams(
                dimension_semantics=("parallel",),
                vmem_limit_bytes=vmem_limit),
            cost_estimate=cost,
        )

    try:
        out = build(pl.Buffered(1))(x, w1p, b1p, w2p, b2p, w3p, b3p)
    except Exception:
        # Fallback if single-buffer pipeline_mode is unsupported: default
        # double-buffering (correct, slightly more VMEM).
        out = build(None)(x, w1p, b1p, w2p, b2p, w3p, b3p)

    if hidden is not None and hidden != hid_p:
        out = out[:, :hidden]  # only when padding was added
    return out


def init_linear_params(key, fan_in, fan_out):
    """Mimics torch.nn.Linear default init: U(-1/sqrt(fan_in), 1/sqrt(fan_in))."""
    kw, kb = jax.random.split(key)
    bound = 1.0 / jnp.sqrt(jnp.asarray(fan_in, jnp.float32))
    # Stored as (in, out) so the kernel does x @ W directly.
    w = jax.random.uniform(kw, (fan_in, fan_out), jnp.float32, -bound, bound)
    b = jax.random.uniform(kb, (1, fan_out), jnp.float32, -bound, bound)
    return w, b


def reference_mlp(x, w1, b1, w2, b2, w3, b3):
    y1 = jnp.maximum(x @ w1 + b1, 0.0)
    y2 = jnp.maximum(y1 @ w2 + b2, 0.0)
    y3 = jnp.maximum(y2 @ w3 + b3, 0.0)
    return y3


if __name__ == "__main__":
    batch, in_size, hidden = 8, 16, 32
    # nn.Dropout is identity in eval(); TODO(synk): training-mode dropout.

    key = jax.random.PRNGKey(0)
    kx, k1, k2, k3 = jax.random.split(key, 4)

    x = jax.random.normal(kx, (batch, in_size), jnp.float32)
    w1, b1 = init_linear_params(k1, in_size, hidden)
    w2, b2 = init_linear_params(k2, hidden, hidden)
    w3, b3 = init_linear_params(k3, hidden, hidden)

    # Pad + cast weights once (hoisted out of the per-call path).
    params = prepare_mlp_encoder_params(w1, b1, w2, b2, w3, b3)

    out = mlp_encoder(x, params, hidden=hidden)
    out = jax.block_until_ready(out)

    ref = reference_mlp(x, w1, b1, w2, b2, w3, b3)
    assert out.shape == (batch, hidden)
    # bf16 MXU inputs with f32 accumulation: loose tolerance vs the f32 reference.
    assert jnp.allclose(out, ref, atol=5e-2, rtol=5e-2), "mismatch vs reference"

    print("KERNEL_OK")
</pallas_src>

<mosaic_0001>
module attributes {stable_mosaic.version = 11 : i64} {
  func.func @_mlp_encoder_kernel(%arg0: i32, %arg1: memref<8x16xf32, #tpu.memory_space<vmem>>, %arg2: memref<16x128xbf16, #tpu.memory_space<vmem>>, %arg3: memref<1x128xf32, #tpu.memory_space<vmem>>, %arg4: memref<128x128xbf16, #tpu.memory_space<vmem>>, %arg5: memref<1x128xf32, #tpu.memory_space<vmem>>, %arg6: memref<128x128xbf16, #tpu.memory_space<vmem>>, %arg7: memref<1x128xf32, #tpu.memory_space<vmem>>, %arg8: memref<8x128xf32, #tpu.memory_space<vmem>>) attributes {dimension_semantics = [#tpu.dimension_semantics<parallel>], iteration_bounds = array<i64: 1>, scalar_prefetch = 0 : i64, scratch_operands = 0 : i64, tpu.core_type = #tpu.core_type<tc>, window_params = [{transform_indices = @transform_0, window_bounds = array<i64: 8, 16>}, {pipeline_mode = #tpu.pipeline_mode<synchronous>, transform_indices = @transform_1, window_bounds = array<i64: 16, 128>}, {pipeline_mode = #tpu.pipeline_mode<synchronous>, transform_indices = @transform_2, window_bounds = array<i64: 1, 128>}, {pipeline_mode = #tpu.pipeline_mode<synchronous>, transform_indices = @transform_3, window_bounds = array<i64: 128, 128>}, {pipeline_mode = #tpu.pipeline_mode<synchronous>, transform_indices = @transform_4, window_bounds = array<i64: 1, 128>}, {pipeline_mode = #tpu.pipeline_mode<synchronous>, transform_indices = @transform_5, window_bounds = array<i64: 128, 128>}, {pipeline_mode = #tpu.pipeline_mode<synchronous>, transform_indices = @transform_6, window_bounds = array<i64: 1, 128>}, {transform_indices = @transform_7, window_bounds = array<i64: 8, 128>}]} {
    %c0 = arith.constant 0 : index
    %c0_0 = arith.constant 0 : index
    %0 = vector.load %arg1[%c0, %c0_0] : memref<8x16xf32, #tpu.memory_space<vmem>>, vector<8x16xf32>
    %1 = arith.truncf %0 : vector<8x16xf32> to vector<8x16xbf16>
    %c0_1 = arith.constant 0 : index
    %c0_2 = arith.constant 0 : index
    %2 = vector.load %arg2[%c0_1, %c0_2] : memref<16x128xbf16, #tpu.memory_space<vmem>>, vector<16x128xbf16>
    %cst = arith.constant dense<0.000000e+00> : vector<8x128xf32>
    %3 = tpu.matmul %1, %2, %cst {dimension_numbers = #tpu.dot_dimension_numbers<[1], [0], [0], [1], [0, 0, 1, 1], [], []>} : vector<8x16xbf16>, vector<16x128xbf16>, vector<8x128xf32> -> vector<8x128xf32>
    %c0_3 = arith.constant 0 : index
    %c0_4 = arith.constant 0 : index
    %4 = vector.load %arg3[%c0_3, %c0_4] : memref<1x128xf32, #tpu.memory_space<vmem>>, vector<1x128xf32>
    %5 = vector.broadcast %4 : vector<1x128xf32> to vector<8x128xf32>
    %6 = arith.addf %3, %5 : vector<8x128xf32>
    %cst_5 = arith.constant 0.000000e+00 : f32
    %7 = vector.broadcast %cst_5 : f32 to vector<8x128xf32>
    %8 = arith.maximumf %6, %7 : vector<8x128xf32>
    %9 = arith.truncf %8 : vector<8x128xf32> to vector<8x128xbf16>
    %c0_6 = arith.constant 0 : index
    %c0_7 = arith.constant 0 : index
    %10 = vector.load %arg4[%c0_6, %c0_7] : memref<128x128xbf16, #tpu.memory_space<vmem>>, vector<128x128xbf16>
    %cst_8 = arith.constant dense<0.000000e+00> : vector<8x128xf32>
    %11 = tpu.matmul %9, %10, %cst_8 {dimension_numbers = #tpu.dot_dimension_numbers<[1], [0], [0], [1], [0, 0, 1, 1], [], []>} : vector<8x128xbf16>, vector<128x128xbf16>, vector<8x128xf32> -> vector<8x128xf32>
    %c0_9 = arith.constant 0 : index
    %c0_10 = arith.constant 0 : index
    %12 = vector.load %arg5[%c0_9, %c0_10] : memref<1x128xf32, #tpu.memory_space<vmem>>, vector<1x128xf32>
    %13 = vector.broadcast %12 : vector<1x128xf32> to vector<8x128xf32>
    %14 = arith.addf %11, %13 : vector<8x128xf32>
    %cst_11 = arith.constant 0.000000e+00 : f32
    %15 = vector.broadcast %cst_11 : f32 to vector<8x128xf32>
    %16 = arith.maximumf %14, %15 : vector<8x128xf32>
    %17 = arith.truncf %16 : vector<8x128xf32> to vector<8x128xbf16>
    %c0_12 = arith.constant 0 : index
    %c0_13 = arith.constant 0 : index
    %18 = vector.load %arg6[%c0_12, %c0_13] : memref<128x128xbf16, #tpu.memory_space<vmem>>, vector<128x128xbf16>
    %cst_14 = arith.constant dense<0.000000e+00> : vector<8x128xf32>
    %19 = tpu.matmul %17, %18, %cst_14 {dimension_numbers = #tpu.dot_dimension_numbers<[1], [0], [0], [1], [0, 0, 1, 1], [], []>} : vector<8x128xbf16>, vector<128x128xbf16>, vector<8x128xf32> -> vector<8x128xf32>
    %c0_15 = arith.constant 0 : index
    %c0_16 = arith.constant 0 : index
    %20 = vector.load %arg7[%c0_15, %c0_16] : memref<1x128xf32, #tpu.memory_space<vmem>>, vector<1x128xf32>
    %21 = vector.broadcast %20 : vector<1x128xf32> to vector<8x128xf32>
    %22 = arith.addf %19, %21 : vector<8x128xf32>
    %cst_17 = arith.constant 0.000000e+00 : f32
    %23 = vector.broadcast %cst_17 : f32 to vector<8x128xf32>
    %24 = arith.maximumf %22, %23 : vector<8x128xf32>
    %c0_18 = arith.constant 0 : index
    %c0_19 = arith.constant 0 : index
    %25 = vector.load %arg8[%c0_18, %c0_19] : memref<8x128xf32, #tpu.memory_space<vmem>>, vector<8x128xf32>
    tpu.vector_store %arg8[%c0_18, %c0_19], %24 {strides = array<i32>} : memref<8x128xf32, #tpu.memory_space<vmem>>, vector<8x128xf32>,
    return
  }
  func.func @transform_0(%arg0: i32) -> (i32, i32) {
    %c0_i32 = arith.constant 0 : i32
    %c0_i32_0 = arith.constant 0 : i32
    return %arg0, %c0_i32 : i32, i32
  }
  func.func @transform_1(%arg0: i32) -> (i32, i32) {
    %c0_i32 = arith.constant 0 : i32
    %c0_i32_0 = arith.constant 0 : i32
    %c0_i32_1 = arith.constant 0 : i32
    return %c0_i32, %c0_i32_0 : i32, i32
  }
  func.func @transform_2(%arg0: i32) -> (i32, i32) {
    %c0_i32 = arith.constant 0 : i32
    %c0_i32_0 = arith.constant 0 : i32
    %c0_i32_1 = arith.constant 0 : i32
    return %c0_i32, %c0_i32_0 : i32, i32
  }
  func.func @transform_3(%arg0: i32) -> (i32, i32) {
    %c0_i32 = arith.constant 0 : i32
    %c0_i32_0 = arith.constant 0 : i32
    %c0_i32_1 = arith.constant 0 : i32
    return %c0_i32, %c0_i32_0 : i32, i32
  }
  func.func @transform_4(%arg0: i32) -> (i32, i32) {
    %c0_i32 = arith.constant 0 : i32
    %c0_i32_0 = arith.constant 0 : i32
    %c0_i32_1 = arith.constant 0 : i32
    return %c0_i32, %c0_i32_0 : i32, i32
  }
  func.func @transform_5(%arg0: i32) -> (i32, i32) {
    %c0_i32 = arith.constant 0 : i32
    %c0_i32_0 = arith.constant 0 : i32
    %c0_i32_1 = arith.constant 0 : i32
    return %c0_i32, %c0_i32_0 : i32, i32
  }
  func.func @transform_6(%arg0: i32) -> (i32, i32) {
    %c0_i32 = arith.constant 0 : i32
    %c0_i32_0 = arith.constant 0 : i32
    %c0_i32_1 = arith.constant 0 : i32
    return %c0_i32, %c0_i32_0 : i32, i32
  }
  func.func @transform_7(%arg0: i32) -> (i32, i32) {
    %c0_i32 = arith.constant 0 : i32
    %c0_i32_0 = arith.constant 0 : i32
    return %arg0, %c0_i32 : i32, i32
  }
}

module attributes {stable_mosaic.version = 11 : i64} {
  func.func @_mlp_encoder_kernel(%arg0: i32, %arg1: memref<8x16xf32, #tpu.memory_space<vmem>>, %arg2: memref<16x128xbf16, #tpu.memory_space<vmem>>, %arg3: memref<1x128xf32, #tpu.memory_space<vmem>>, %arg4: memref<128x128xbf16, #tpu.memory_space<vmem>>, %arg5: memref<1x128xf32, #tpu.memory_space<vmem>>, %arg6: memref<128x128xbf16, #tpu.memory_space<vmem>>, %arg7: memref<1x128xf32, #tpu.memory_space<vmem>>, %arg8: memref<8x128xf32, #tpu.memory_space<vmem>>) attributes {dimension_semantics = [#tpu.dimension_semantics<parallel>], iteration_bounds = array<i64: 1>, scalar_prefetch = 0 : i64, scratch_operands = 0 : i64, tpu.core_type = #tpu.core_type<tc>, window_params = [{transform_indices = @transform_0, window_bounds = array<i64: 8, 16>}, {pipeline_mode = #tpu.pipeline_mode<synchronous>, transform_indices = @transform_1, window_bounds = array<i64: 16, 128>}, {pipeline_mode = #tpu.pipeline_mode<synchronous>, transform_indices = @transform_2, window_bounds = array<i64: 1, 128>}, {pipeline_mode = #tpu.pipeline_mode<synchronous>, transform_indices = @transform_3, window_bounds = array<i64: 128, 128>}, {pipeline_mode = #tpu.pipeline_mode<synchronous>, transform_indices = @transform_4, window_bounds = array<i64: 1, 128>}, {pipeline_mode = #tpu.pipeline_mode<synchronous>, transform_indices = @transform_5, window_bounds = array<i64: 128, 128>}, {pipeline_mode = #tpu.pipeline_mode<synchronous>, transform_indices = @transform_6, window_bounds = array<i64: 1, 128>}, {transform_indices = @transform_7, window_bounds = array<i64: 8, 128>}]} {
    %c0 = arith.constant 0 : index
    %c0_0 = arith.constant 0 : index
    %0 = vector.load %arg1[%c0, %c0_0] : memref<8x16xf32, #tpu.memory_space<vmem>>, vector<8x16xf32>
    %1 = arith.truncf %0 : vector<8x16xf32> to vector<8x16xbf16>
    %c0_1 = arith.constant 0 : index
    %c0_2 = arith.constant 0 : index
    %2 = vector.load %arg2[%c0_1, %c0_2] : memref<16x128xbf16, #tpu.memory_space<vmem>>, vector<16x128xbf16>
    %cst = arith.constant dense<0.000000e+00> : vector<8x128xf32>
    %3 = tpu.matmul %1, %2, %cst {dimension_numbers = #tpu.dot_dimension_numbers<[1], [0], [0], [1], [0, 0, 1, 1], [], []>} : vector<8x16xbf16>, vector<16x128xbf16>, vector<8x128xf32> -> vector<8x128xf32>
    %c0_3 = arith.constant 0 : index
    %c0_4 = arith.constant 0 : index
    %4 = vector.load %arg3[%c0_3, %c0_4] : memref<1x128xf32, #tpu.memory_space<vmem>>, vector<1x128xf32>
    %5 = vector.broadcast %4 : vector<1x128xf32> to vector<8x128xf32>
    %6 = arith.addf %3, %5 : vector<8x128xf32>
    %cst_5 = arith.constant 0.000000e+00 : f32
    %7 = vector.broadcast %cst_5 : f32 to vector<8x128xf32>
    %8 = arith.maximumf %6, %7 : vector<8x128xf32>
    %9 = arith.truncf %8 : vector<8x128xf32> to vector<8x128xbf16>
    %c0_6 = arith.constant 0 : index
    %c0_7 = arith.constant 0 : index
    %10 = vector.load %arg4[%c0_6, %c0_7] : memref<128x128xbf16, #tpu.memory_space<vmem>>, vector<128x128xbf16>
    %cst_8 = arith.constant dense<0.000000e+00> : vector<8x128xf32>
    %11 = tpu.matmul %9, %10, %cst_8 {dimension_numbers = #tpu.dot_dimension_numbers<[1], [0], [0], [1], [0, 0, 1, 1], [], []>} : vector<8x128xbf16>, vector<128x128xbf16>, vector<8x128xf32> -> vector<8x128xf32>
    %c0_9 = arith.constant 0 : index
    %c0_10 = arith.constant 0 : index
    %12 = vector.load %arg5[%c0_9, %c0_10] : memref<1x128xf32, #tpu.memory_space<vmem>>, vector<1x128xf32>
    %13 = vector.broadcast %12 : vector<1x128xf32> to vector<8x128xf32>
    %14 = arith.addf %11, %13 : vector<8x128xf32>
    %cst_11 = arith.constant 0.000000e+00 : f32
    %15 = vector.broadcast %cst_11 : f32 to vector<8x128xf32>
    %16 = arith.maximumf %14, %15 : vector<8x128xf32>
    %17 = arith.truncf %16 : vector<8x128xf32> to vector<8x128xbf16>
    %c0_12 = arith.constant 0 : index
    %c0_13 = arith.constant 0 : index
    %18 = vector.load %arg6[%c0_12, %c0_13] : memref<128x128xbf16, #tpu.memory_space<vmem>>, vector<128x128xbf16>
    %cst_14 = arith.constant dense<0.000000e+00> : vector<8x128xf32>
    %19 = tpu.matmul %17, %18, %cst_14 {dimension_numbers = #tpu.dot_dimension_numbers<[1], [0], [0], [1], [0, 0, 1, 1], [], []>} : vector<8x128xbf16>, vector<128x128xbf16>, vector<8x128xf32> -> vector<8x128xf32>
    %c0_15 = arith.constant 0 : index
    %c0_16 = arith.constant 0 : index
    %20 = vector.load %arg7[%c0_15, %c0_16] : memref<1x128xf32, #tpu.memory_space<vmem>>, vector<1x128xf32>
    %21 = vector.broadcast %20 : vector<1x128xf32> to vector<8x128xf32>
    %22 = arith.addf %19, %21 : vector<8x128xf32>
    %cst_17 = arith.constant 0.000000e+00 : f32
    %23 = vector.broadcast %cst_17 : f32 to vector<8x128xf32>
    %24 = arith.maximumf %22, %23 : vector<8x128xf32>
    %c0_18 = arith.constant 0 : index
    %c0_19 = arith.constant 0 : index
    %25 = vector.load %arg8[%c0_18, %c0_19] : memref<8x128xf32, #tpu.memory_space<vmem>>, vector<8x128xf32>
    tpu.vector_store %arg8[%c0_18, %c0_19], %24 {strides = array<i32>} : memref<8x128xf32, #tpu.memory_space<vmem>>, vector<8x128xf32>,
    return
  }
  func.func @transform_0(%arg0: i32) -> (i32, i32) {
    %c0_i32 = arith.constant 0 : i32
    %c0_i32_0 = arith.constant 0 : i32
    return %arg0, %c0_i32 : i32, i32
  }
  func.func @transform_1(%arg0: i32) -> (i32, i32) {
    %c0_i32 = arith.constant 0 : i32
    %c0_i32_0 = arith.constant 0 : i32
    %c0_i32_1 = arith.constant 0 : i32
    return %c0_i32, %c0_i32_0 : i32, i32
  }
  func.func @transform_2(%arg0: i32) -> (i32, i32) {
    %c0_i32 = arith.constant 0 : i32
    %c0_i32_0 = arith.constant 0 : i32
    %c0_i32_1 = arith.constant 0 : i32
    return %c0_i32, %c0_i32_0 : i32, i32
  }
  func.func @transform_3(%arg0: i32) -> (i32, i32) {
    %c0_i32 = arith.constant 0 : i32
    %c0_i32_0 = arith.constant 0 : i32
    %c0_i32_1 = arith.constant 0 : i32
    return %c0_i32, %c0_i32_0 : i32, i32
  }
  func.func @transform_4(%arg0: i32) -> (i32, i32) {
    %c0_i32 = arith.constant 0 : i32
    %c0_i32_0 = arith.constant 0 : i32
    %c0_i32_1 = arith.constant 0 : i32
    return %c0_i32, %c0_i32_0 : i32, i32
  }
  func.func @transform_5(%arg0: i32) -> (i32, i32) {
    %c0_i32 = arith.constant 0 : i32
    %c0_i32_0 = arith.constant 0 : i32
    %c0_i32_1 = arith.constant 0 : i32
    return %c0_i32, %c0_i32_0 : i32, i32
  }
  func.func @transform_6(%arg0: i32) -> (i32, i32) {
    %c0_i32 = arith.constant 0 : i32
    %c0_i32_0 = arith.constant 0 : i32
    %c0_i32_1 = arith.constant 0 : i32
    return %c0_i32, %c0_i32_0 : i32, i32
  }
  func.func @transform_7(%arg0: i32) -> (i32, i32) {
    %c0_i32 = arith.constant 0 : i32
    %c0_i32_0 = arith.constant 0 : i32
    return %arg0, %c0_i32 : i32, i32
  }
}

</mosaic_0001>

<bundles_post_ra>
// kernel: tpu_custom_call.1
= control target key start
LH: loop header
LB: loop body
LE: loop exit
PB: predicated region body
PF: predicated region fallthrough
CT: control target
= control target key end

     0   :  { %12 = vsyncpa [#allocation3], 0  ;;  %s765_s0 = inlined_call_operand.hbm [shape: f32[8,16], index: 0, kind: input, shape index: {}]   ;;  %s766_s1 = inlined_call_operand.hbm [shape: bf16[16,128], index: 1, kind: input, shape index: {}]   ;;  %s767_s2 = inlined_call_operand.vmem [shape: f32[1,128], index: 2, kind: input, shape index: {}]   ;;  %s768_s3 = inlined_call_operand.hbm [shape: bf16[128,128], index: 3, kind: input, shape index: {}]   ;;  %s769_s4 = inlined_call_operand.vmem [shape: f32[1,128], index: 4, kind: input, shape index: {}]   ;;  %s770_s5 = inlined_call_operand.hbm [shape: bf16[128,128], index: 5, kind: input, shape index: {}]   ;;  %s771_s6 = inlined_call_operand.vmem [shape: f32[1,128], index: 6, kind: input, shape index: {}]   ;;  %s772_s7 = inlined_call_operand.hbm [shape: f32[8,128], index: 7, kind: output, shape index: {}]  }
   0x1   :  { %13 = vsyncpa [#allocation6], 0 }
   0x2   :  { %14 = vsyncpa [#allocation9], 0 }
   0x3   :  { %15 = vsyncpa [#allocation4], 0  ;;  %s618_s24 = smov [#allocation5]   ;;  %s500_s28 = scalar_lea.hbm %s766_s1, 128 }
   0x4   :  { %s31_s25 = sshll.u32 %s618_s24, 4  ;;  %p501_p0 = scmp.ne.s32.totalorder %s766_s1, %s500_s28  ;;  %s32_s25 = int_to_ptr.vmem [resolvable:$true] %s31_s25 }
   0x5   :  { %p504_p1 = scmp.lt.u32.totalorder %s500_s28, %s766_s1 }
   0x7   :  { %p506_p2 = pnand %p504_p1, %p501_p0 }
   0x9   :  { %509 = shalt.err (!%p506_p2)
}
   0xa   :  { %s510_s10 = scalar_lea.vmem %s32_s25, 128  ;;  %p515_p4 = scmp.lt.s32.totalorder %s32_s25, %s32_s25 }
   0xb   :  { %p511_p3 = scmp.ne.s32.totalorder %s32_s25, %s510_s10  ;;  %p516_p5 = scmp.lt.s32.totalorder %s510_s10, %s510_s10 }
   0xd   :  { %p517_p6 = por %p516_p5, %p515_p4 }
   0xf   :  { %p518_p7 = pnand %p517_p6, %p511_p3 }
  0x11   :  { %521 = shalt.err (!%p518_p7)
}
  0x12   :  { %s619_s11 = smov 64   ;;  %s620_s12 = smov 4  }
  0x13   :  { %37 = dma.hbm_to_vmem [thread:$0]  %s766_s1, 128, %s32_s25, [#allocation6], %s619_s11, %s619_s11, %s620_s12  }
  0x14   :  { %s621_s15 = smov [#allocation2]   ;;  %s622_s17 = smov [#allocation7]  }
  0x15   :  { %s22_s16 = sshll.u32 %s621_s15, 4  ;;  %s45_s18 = sshll.u32 %s622_s17, 4  ;;  %s23_s16 = int_to_ptr.vmem [resolvable:$true] %s22_s16  ;;  %s46_s18 = int_to_ptr.vmem [resolvable:$true] %s45_s18 }
  0x16   :  { %s522_s21 = scalar_lea.hbm %s765_s0, 128 }
  0x17   :  { %p523_p8 = scmp.ne.s32.totalorder %s765_s0, %s522_s21  ;;  %p526_p9 = scmp.lt.u32.totalorder %s522_s21, %s765_s0 }
  0x19   :  { %p528_p10 = pnand %p526_p9, %p523_p8 }
  0x1b   :  { %531 = shalt.err (!%p528_p10)
}
  0x1c   :  { %s532_s1 = scalar_lea.vmem %s23_s16, 128  ;;  %p537_p12 = scmp.lt.s32.totalorder %s23_s16, %s23_s16 }
  0x1d   :  { %p533_p11 = scmp.ne.s32.totalorder %s23_s16, %s532_s1  ;;  %p538_p13 = scmp.lt.s32.totalorder %s532_s1, %s532_s1 }
  0x1f   :  { %p539_p0 = por %p538_p13, %p537_p12 }
  0x21   :  { %p540_p1 = pnand %p539_p0, %p533_p11 }
  0x23   :  { %543 = shalt.err (!%p540_p1)
}
  0x24   :  { %25 = dma.hbm_to_vmem [thread:$0]  %s765_s0, 128, %s23_s16, [#allocation3]  }
  0x25   :  { %s544_s30 = scalar_lea.hbm %s768_s3, 1024 }
  0x26   :  { %p545_p2 = scmp.ne.s32.totalorder %s768_s3, %s544_s30  ;;  %p548_p3 = scmp.lt.u32.totalorder %s544_s30, %s768_s3 }
  0x28   :  { %p550_p4 = pnand %p548_p3, %p545_p2 }
  0x2a   :  { %553 = shalt.err (!%p550_p4)
}
  0x2b   :  { %s554_s14 = scalar_lea.vmem %s46_s18, 1024  ;;  %p559_p6 = scmp.lt.s32.totalorder %s46_s18, %s46_s18 }
  0x2c   :  { %p555_p5 = scmp.ne.s32.totalorder %s46_s18, %s554_s14  ;;  %p560_p7 = scmp.lt.s32.totalorder %s554_s14, %s554_s14 }
  0x2e   :  { %p561_p8 = por %p560_p7, %p559_p6 }
  0x30   :  { %p562_p9 = pnand %p561_p8, %p555_p5 }
  0x32   :  { %565 = shalt.err (!%p562_p9)
}
  0x33   :  { %51 = dma.hbm_to_vmem [thread:$0]  %s768_s3, 1024, %s46_s18, [#allocation6], %s619_s11, %s619_s11, %s620_s12  }
  0x34   :  { %s623_s16 = smov [#allocation8]   ;;  %s566_s21 = scalar_lea.hbm %s770_s5, 1024 }
  0x35   :  { %s59_s17 = sshll.u32 %s623_s16, 4  ;;  %p567_p10 = scmp.ne.s32.totalorder %s770_s5, %s566_s21  ;;  %s60_s17 = int_to_ptr.vmem [resolvable:$true] %s59_s17 }
  0x36   :  { %p570_p11 = scmp.lt.u32.totalorder %s566_s21, %s770_s5 }
  0x38   :  { %p572_p12 = pnand %p570_p11, %p567_p10 }
  0x3a   :  { %575 = shalt.err (!%p572_p12)
}
  0x3b   :  { %s576_s1 = scalar_lea.vmem %s60_s17, 1024  ;;  %p581_p0 = scmp.lt.s32.totalorder %s60_s17, %s60_s17 }
  0x3c   :  { %p577_p13 = scmp.ne.s32.totalorder %s60_s17, %s576_s1  ;;  %p582_p1 = scmp.lt.s32.totalorder %s576_s1, %s576_s1 }
  0x3e   :  { %p583_p2 = por %p582_p1, %p581_p0 }
  0x40   :  { %p584_p3 = pnand %p583_p2, %p577_p13 }
  0x42   :  { %587 = shalt.err (!%p584_p3)
}
  0x43   :  { %65 = dma.hbm_to_vmem [thread:$0]  %s770_s5, 1024, %s60_s17, [#allocation9], %s619_s11, %s619_s11, %s620_s12  }
  0x44   :  { %610 = dma.done.wait [#allocation3], 128  }
  0x45   :  { %611 = vsyncadd [#allocation3], 4294967168 }
  0x46   :  { %612 = dma.done.wait [#allocation6], 1152  }
  0x47   :  { %613 = vsyncadd [#allocation6], 4294966144 }
  0x48   :  { %614 = dma.done.wait [#allocation9], 1024  }
  0x49   :  { %615 = vsyncadd [#allocation9], 4294966272  ;;  %v624_v0 = vmov 0.0   ;;  %vm625_vm0 = vmmov 0   ;;  %v483_v1 = vld [vmem:[#allocation5] sm:$0xff]   ;;  %v81_v2 = vld [vmem:[#allocation2] sm:$0xff] }
  0x4a   :  { %428 = vmatprep.subr.bf16.mxu0 %v624_v0  ;;  %430 = vmatprep.mubr.msk.bf16.mxu0 %vm625_vm0, %v624_v0  ;;  %v82_v3 = vpack.c.bf16 %v81_v2, %v81_v2  ;;  %vm98_vm1 = vcmask 130048   ;;  %v484_v4 = vld [vmem:[#allocation7] sm:$0xff]   ;;  %v485_v5 = vld [vmem:[#allocation7 + $0x8] sm:$0xff]   ;;  %v486_v6 = vld [vmem:[#allocation7 + $0x10] sm:$0xff]   ;;  %s626_s28 = smov [#allocation10]  }
  0x4b   :  { %434 = vmatprep.subr.bf16.mxu1 %v624_v0  ;;  %450 = vmatprep.mubr.msk.bf16.mxu1 %vm625_vm0, %v624_v0  ;;  %v487_v7 = vld [vmem:[#allocation7 + $0x18] sm:$0xff]   ;;  %v488_v8 = vld [vmem:[#allocation7 + $0x20] sm:$0xff]   ;;  %v489_v9 = vld [vmem:[#allocation7 + $0x28] sm:$0xff]   ;;  %s376_s29 = sshll.u32 %s626_s28, 4  ;;  %s377_s29 = int_to_ptr.vmem [resolvable:$true] %s376_s29 }
  0x4c   :  { %429 = vmatpush3.bf16.msra.mxu0 %v483_v1  ;;  %435 = vmatpush3.bf16.msra.mxu1 %v484_v4  ;;  %v490_v10 = vld [vmem:[#allocation7 + $0x30] sm:$0xff]   ;;  %v491_v11 = vld [vmem:[#allocation7 + $0x38] sm:$0xff]   ;;  %v492_v12 = vld [vmem:[#allocation8] sm:$0xff]   ;;  %p593_p5 = scmp.lt.s32.totalorder %s377_s29, %s377_s29 }
  0x4d   :  { %454 = vmatprep.subr.bf16.mxu0 %v624_v0  ;;  %436 = vmatprep.subr.bf16.mxu1 %v624_v0  ;;  %v493_v13 = vld [vmem:[#allocation8 + $0x8] sm:$0xff]   ;;  %v494_v14 = vld [vmem:[#allocation8 + $0x10] sm:$0xff]   ;;  %v495_v15 = vld [vmem:[#allocation8 + $0x18] sm:$0xff]  }
  0x4e   :  { %v496_v16 = vld [vmem:[#allocation8 + $0x20] sm:$0xff]   ;;  %v497_v17 = vld [vmem:[#allocation8 + $0x28] sm:$0xff]   ;;  %v387_v18 = vld [vmem:[%s767_s2] ss:$0 sm:$0xff] }
  0x4f   :  { %431 = vmatmul.mubr.msk.bf16.vlgmr.msra.gmra.mrb[0].mxu0 %vm98_vm1, %v82_v3  ;;  %v498_v26 = vld [vmem:[#allocation8 + $0x30] sm:$0xff]   ;;  %v499_v27 = vld [vmem:[#allocation8 + $0x38] sm:$0xff]  }
  0x50   :  { %470 = vmatprep.mubr.msk.bf16.mxu0 %vm625_vm0, %v624_v0  ;;  %437 = vmatpush3.bf16.msra.mxu1 %v485_v5  ;;  %v390_v28 = vld [vmem:[%s769_s4] ss:$0 sm:$0xff]  ;;  %s588_s4 = scalar_lea.vmem %s377_s29, 128 }
  0x51   :  { %438 = vmatprep.subr.bf16.mxu1 %v624_v0  ;;  %455 = vmatpush3.bf16.msra.mxu0 %v492_v12  ;;  %v399_v36 = vld [vmem:[%s771_s6] ss:$0 sm:$0xff]  ;;  %p589_p4 = scmp.ne.s32.totalorder %s377_s29, %s588_s4  ;;  %p594_p6 = scmp.lt.s32.totalorder %s588_s4, %s588_s4 }
  0x52   :  { %456 = vmatprep.subr.bf16.mxu0 %v624_v0 }
  0x53   :  { %p595_p7 = por %p594_p6, %p593_p5 }
  0x54   :  { %439 = vmatpush3.bf16.msra.mxu1 %v486_v6 }
  0x55   :  { %440 = vmatprep.subr.bf16.mxu1 %v624_v0  ;;  %457 = vmatpush3.bf16.msra.mxu0 %v493_v13  ;;  %p596_p8 = pnand %p595_p7, %p589_p4 }
  0x56   :  { %458 = vmatprep.subr.bf16.mxu0 %v624_v0 }
  0x58   :  { %441 = vmatpush3.bf16.msra.mxu1 %v487_v7 }
  0x59   :  { %442 = vmatprep.subr.bf16.mxu1 %v624_v0  ;;  %459 = vmatpush3.bf16.msra.mxu0 %v494_v14 }
  0x5a   :  { %460 = vmatprep.subr.bf16.mxu0 %v624_v0 }
  0x5c   :  { %443 = vmatpush3.bf16.msra.mxu1 %v488_v8 }
  0x5d   :  { %444 = vmatprep.subr.bf16.mxu1 %v624_v0  ;;  %461 = vmatpush3.bf16.msra.mxu0 %v495_v15 }
  0x5e   :  { %462 = vmatprep.subr.bf16.mxu0 %v624_v0 }
  0x60   :  { %445 = vmatpush3.bf16.msra.mxu1 %v489_v9 }
  0x61   :  { %446 = vmatprep.subr.bf16.mxu1 %v624_v0  ;;  %463 = vmatpush3.bf16.msra.mxu0 %v496_v16 }
  0x62   :  { %464 = vmatprep.subr.bf16.mxu0 %v624_v0 }
  0x64   :  { %447 = vmatpush3.bf16.msra.mxu1 %v490_v10 }
  0x65   :  { %448 = vmatprep.subr.bf16.mxu1 %v624_v0  ;;  %465 = vmatpush3.bf16.msra.mxu0 %v497_v17 }
  0x66   :  { %466 = vmatprep.subr.bf16.mxu0 %v624_v0 }
  0x68   :  { %449 = vmatpush3.bf16.msra.mxu1 %v491_v11 }
  0x69   :  { %467 = vmatpush3.bf16.msra.mxu0 %v498_v26 }
  0x6a   :  { %468 = vmatprep.subr.bf16.mxu0 %v624_v0 }
  0x6d   :  { %469 = vmatpush3.bf16.msra.mxu0 %v499_v27 }
 0x122   :  { %v136_v19 = vpop.f32.mrb[0].mxu0 }
 0x123   :  { %v137_v20 = vadd.f32 %v387_v18, %v136_v19  ;;  %v432_v21 = vpop.f32.mrb[1].mxu0 }
 0x124   :  { %v139_v22 = vpop.f32.mrb[2].mxu0 }
 0x125   :  { %v142_v23 = vmax.f32 %v137_v20, 0.0  ;;  %v433_v24 = vpop.f32.mrb[3].mxu0 }
 0x127   :  { %v143_v25 = vpack.c.bf16 %v142_v23, %v142_v23 }
 0x129   :  { %451 = vmatmul.mubr.bf16.vlgmr.msra.gmra.mrb[0].mxu1 %v143_v25 }
 0x1fc   :  { %v249_v29 = vpop.f32.mrb[0].mxu1 }
 0x1fd   :  { %v250_v30 = vadd.f32 %v390_v28, %v249_v29  ;;  %v452_v31 = vpop.f32.mrb[1].mxu1 }
 0x1fe   :  { %v252_v32 = vpop.f32.mrb[2].mxu1 }
 0x1ff   :  { %v255_v33 = vmax.f32 %v250_v30, 0.0  ;;  %v453_v34 = vpop.f32.mrb[3].mxu1 }
 0x201   :  { %v256_v35 = vpack.c.bf16 %v255_v33, %v255_v33 }
 0x203   :  { %471 = vmatmul.mubr.bf16.vlgmr.msra.gmra.mrb[4].mxu0 %v256_v35 }
 0x2d6   :  { %v362_v37 = vpop.f32.mrb[4].mxu0 }
 0x2d7   :  { %v363_v38 = vadd.f32 %v399_v36, %v362_v37  ;;  %v472_v39 = vpop.f32.mrb[5].mxu0 }
 0x2d8   :  { %v365_v40 = vpop.f32.mrb[6].mxu0 }
 0x2d9   :  { %v368_v41 = vmax.f32 %v363_v38, 0.0  ;;  %v473_v42 = vpop.f32.mrb[7].mxu0 }
 0x2db   :  { %369 = vst [vmem:[#allocation10] sm:$0xff] %v368_v41 }
 0x2dc   :  { %599 = shalt.err (!%p596_p8)
}
 0x2dd   :  { %s600_s6 = scalar_lea.hbm %s772_s7, 128 }
 0x2de   :  { %p601_p9 = scmp.ne.s32.totalorder %s772_s7, %s600_s6  ;;  %p604_p10 = scmp.lt.u32.totalorder %s600_s6, %s772_s7 }
 0x2e0   :  { %p606_p11 = pnand %p604_p10, %p601_p9 }
 0x2e2   :  { %609 = shalt.err (!%p606_p11)
}
 0x2e3   :  { %379 = dma.vmem_to_hbm [thread:$0]  %s377_s29, 128, %s772_s7, [#allocation4]  }
 0x2e4   :  { %616 = dma.done.wait [#allocation4], 128  }
 0x2e5   :  { %617 = vsyncadd [#allocation4], 4294967168 }
 0x2e6   :  { %383 = vsyncpa [#allocation3], 1 }
 0x2e7   :  { %384 = vsyncpa [#allocation6], 1 }
 0x2e8   :  { %385 = vsyncpa [#allocation9], 1 }
 0x2e9   :  { %386 = vsyncpa [#allocation4], 1 }

// kernel: tpu_custom_call.1
= control target key start
LH: loop header
LB: loop body
LE: loop exit
PB: predicated region body
PF: predicated region fallthrough
CT: control target
= control target key end

     0   :  { %12 = vsyncpa [#allocation3], 0  ;;  %s765_s0 = inlined_call_operand.hbm [shape: f32[8,16], index: 0, kind: input, shape index: {}]   ;;  %s766_s1 = inlined_call_operand.hbm [shape: bf16[16,128], index: 1, kind: input, shape index: {}]   ;;  %s767_s2 = inlined_call_operand.vmem [shape: f32[1,128], index: 2, kind: input, shape index: {}]   ;;  %s768_s3 = inlined_call_operand.hbm [shape: bf16[128,128], index: 3, kind: input, shape index: {}]   ;;  %s769_s4 = inlined_call_operand.vmem [shape: f32[1,128], index: 4, kind: input, shape index: {}]   ;;  %s770_s5 = inlined_call_operand.hbm [shape: bf16[128,128], index: 5, kind: input, shape index: {}]   ;;  %s771_s6 = inlined_call_operand.vmem [shape: f32[1,128], index: 6, kind: input, shape index: {}]   ;;  %s772_s7 = inlined_call_operand.hbm [shape: f32[8,128], index: 7, kind: output, shape index: {}]  }
   0x1   :  { %13 = vsyncpa [#allocation6], 0 }
   0x2   :  { %14 = vsyncpa [#allocation9], 0 }
   0x3   :  { %15 = vsyncpa [#allocation4], 0  ;;  %s618_s24 = smov [#allocation5]   ;;  %s500_s28 = scalar_lea.hbm %s766_s1, 128 }
   0x4   :  { %s31_s25 = sshll.u32 %s618_s24, 4  ;;  %p501_p0 = scmp.ne.s32.totalorder %s766_s1, %s500_s28  ;;  %s32_s25 = int_to_ptr.vmem [resolvable:$true] %s31_s25 }
   0x5   :  { %p504_p1 = scmp.lt.u32.totalorder %s500_s28, %s766_s1 }
   0x7   :  { %p506_p2 = pnand %p504_p1, %p501_p0 }
   0x9   :  { %509 = shalt.err (!%p506_p2)
}
   0xa   :  { %s510_s10 = scalar_lea.vmem %s32_s25, 128  ;;  %p515_p4 = scmp.lt.s32.totalorder %s32_s25, %s32_s25 }
   0xb   :  { %p511_p3 = scmp.ne.s32.totalorder %s32_s25, %s510_s10  ;;  %p516_p5 = scmp.lt.s32.totalorder %s510_s10, %s510_s10 }
   0xd   :  { %p517_p6 = por %p516_p5, %p515_p4 }
   0xf   :  { %p518_p7 = pnand %p517_p6, %p511_p3 }
  0x11   :  { %521 = shalt.err (!%p518_p7)
}
  0x12   :  { %s619_s11 = smov 64   ;;  %s620_s12 = smov 4  }
  0x13   :  { %37 = dma.hbm_to_vmem [thread:$0]  %s766_s1, 128, %s32_s25, [#allocation6], %s619_s11, %s619_s11, %s620_s12  }
  0x14   :  { %s621_s15 = smov [#allocation2]   ;;  %s622_s17 = smov [#allocation7]  }
  0x15   :  { %s22_s16 = sshll.u32 %s621_s15, 4  ;;  %s45_s18 = sshll.u32 %s622_s17, 4  ;;  %s23_s16 = int_to_ptr.vmem [resolvable:$true] %s22_s16  ;;  %s46_s18 = int_to_ptr.vmem [resolvable:$true] %s45_s18 }
  0x16   :  { %s522_s21 = scalar_lea.hbm %s765_s0, 128 }
  0x17   :  { %p523_p8 = scmp.ne.s32.totalorder %s765_s0, %s522_s21  ;;  %p526_p9 = scmp.lt.u32.totalorder %s522_s21, %s765_s0 }
  0x19   :  { %p528_p10 = pnand %p526_p9, %p523_p8 }
  0x1b   :  { %531 = shalt.err (!%p528_p10)
}
  0x1c   :  { %s532_s1 = scalar_lea.vmem %s23_s16, 128  ;;  %p537_p12 = scmp.lt.s32.totalorder %s23_s16, %s23_s16 }
  0x1d   :  { %p533_p11 = scmp.ne.s32.totalorder %s23_s16, %s532_s1  ;;  %p538_p13 = scmp.lt.s32.totalorder %s532_s1, %s532_s1 }
  0x1f   :  { %p539_p0 = por %p538_p13, %p537_p12 }
  0x21   :  { %p540_p1 = pnand %p539_p0, %p533_p11 }
  0x23   :  { %543 = shalt.err (!%p540_p1)
}
  0x24   :  { %25 = dma.hbm_to_vmem [thread:$0]  %s765_s0, 128, %s23_s16, [#allocation3]  }
  0x25   :  { %s544_s30 = scalar_lea.hbm %s768_s3, 1024 }
  0x26   :  { %p545_p2 = scmp.ne.s32.totalorder %s768_s3, %s544_s30  ;;  %p548_p3 = scmp.lt.u32.totalorder %s544_s30, %s768_s3 }
  0x28   :  { %p550_p4 = pnand %p548_p3, %p545_p2 }
  0x2a   :  { %553 = shalt.err (!%p550_p4)
}
  0x2b   :  { %s554_s14 = scalar_lea.vmem %s46_s18, 1024  ;;  %p559_p6 = scmp.lt.s32.totalorder %s46_s18, %s46_s18 }
  0x2c   :  { %p555_p5 = scmp.ne.s32.totalorder %s46_s18, %s554_s14  ;;  %p560_p7 = scmp.lt.s32.totalorder %s554_s14, %s554_s14 }
  0x2e   :  { %p561_p8 = por %p560_p7, %p559_p6 }
  0x30   :  { %p562_p9 = pnand %p561_p8, %p555_p5 }
  0x32   :  { %565 = shalt.err (!%p562_p9)
}
  0x33   :  { %51 = dma.hbm_to_vmem [thread:$0]  %s768_s3, 1024, %s46_s18, [#allocation6], %s619_s11, %s619_s11, %s620_s12  }
  0x34   :  { %s623_s16 = smov [#allocation8]   ;;  %s566_s21 = scalar_lea.hbm %s770_s5, 1024 }
  0x35   :  { %s59_s17 = sshll.u32 %s623_s16, 4  ;;  %p567_p10 = scmp.ne.s32.totalorder %s770_s5, %s566_s21  ;;  %s60_s17 = int_to_ptr.vmem [resolvable:$true] %s59_s17 }
  0x36   :  { %p570_p11 = scmp.lt.u32.totalorder %s566_s21, %s770_s5 }
  0x38   :  { %p572_p12 = pnand %p570_p11, %p567_p10 }
  0x3a   :  { %575 = shalt.err (!%p572_p12)
}
  0x3b   :  { %s576_s1 = scalar_lea.vmem %s60_s17, 1024  ;;  %p581_p0 = scmp.lt.s32.totalorder %s60_s17, %s60_s17 }
  0x3c   :  { %p577_p13 = scmp.ne.s32.totalorder %s60_s17, %s576_s1  ;;  %p582_p1 = scmp.lt.s32.totalorder %s576_s1, %s576_s1 }
  0x3e   :  { %p583_p2 = por %p582_p1, %p581_p0 }
  0x40   :  { %p584_p3 = pnand %p583_p2, %p577_p13 }
  0x42   :  { %587 = shalt.err (!%p584_p3)
}
  0x43   :  { %65 = dma.hbm_to_vmem [thread:$0]  %s770_s5, 1024, %s60_s17, [#allocation9], %s619_s11, %s619_s11, %s620_s12  }
  0x44   :  { %610 = dma.done.wait [#allocation3], 128  }
  0x45   :  { %611 = vsyncadd [#allocation3], 4294967168 }
  0x46   :  { %612 = dma.done.wait [#allocation6], 1152  }
  0x47   :  { %613 = vsyncadd [#allocation6], 4294966144 }
  0x48   :  { %614 = dma.done.wait [#allocation9], 1024  }
  0x49   :  { %615 = vsyncadd [#allocation9], 4294966272  ;;  %v624_v0 = vmov 0.0   ;;  %vm625_vm0 = vmmov 0   ;;  %v483_v1 = vld [vmem:[#allocation5] sm:$0xff]   ;;  %v81_v2 = vld [vmem:[#allocation2] sm:$0xff] }
  0x4a   :  { %428 = vmatprep.subr.bf16.mxu0 %v624_v0  ;;  %430 = vmatprep.mubr.msk.bf16.mxu0 %vm625_vm0, %v624_v0  ;;  %v82_v3 = vpack.c.bf16 %v81_v2, %v81_v2  ;;  %vm98_vm1 = vcmask 130048   ;;  %v484_v4 = vld [vmem:[#allocation7] sm:$0xff]   ;;  %v485_v5 = vld [vmem:[#allocation7 + $0x8] sm:$0xff]   ;;  %v486_v6 = vld [vmem:[#allocation7 + $0x10] sm:$0xff]   ;;  %s626_s28 = smov [#allocation10]  }
  0x4b   :  { %434 = vmatprep.subr.bf16.mxu1 %v624_v0  ;;  %450 = vmatprep.mubr.msk.bf16.mxu1 %vm625_vm0, %v624_v0  ;;  %v487_v7 = vld [vmem:[#allocation7 + $0x18] sm:$0xff]   ;;  %v488_v8 = vld [vmem:[#allocation7 + $0x20] sm:$0xff]   ;;  %v489_v9 = vld [vmem:[#allocation7 + $0x28] sm:$0xff]   ;;  %s376_s29 = sshll.u32 %s626_s28, 4  ;;  %s377_s29 = int_to_ptr.vmem [resolvable:$true] %s376_s29 }
  0x4c   :  { %429 = vmatpush3.bf16.msra.mxu0 %v483_v1  ;;  %435 = vmatpush3.bf16.msra.mxu1 %v484_v4  ;;  %v490_v10 = vld [vmem:[#allocation7 + $0x30] sm:$0xff]   ;;  %v491_v11 = vld [vmem:[#allocation7 + $0x38] sm:$0xff]   ;;  %v492_v12 = vld [vmem:[#allocation8] sm:$0xff]   ;;  %p593_p5 = scmp.lt.s32.totalorder %s377_s29, %s377_s29 }
  0x4d   :  { %454 = vmatprep.subr.bf16.mxu0 %v624_v0  ;;  %436 = vmatprep.subr.bf16.mxu1 %v624_v0  ;;  %v493_v13 = vld [vmem:[#allocation8 + $0x8] sm:$0xff]   ;;  %v494_v14 = vld [vmem:[#allocation8 + $0x10] sm:$0xff]   ;;  %v495_v15 = vld [vmem:[#allocation8 + $0x18] sm:$0xff]  }
  0x4e   :  { %v496_v16 = vld [vmem:[#allocation8 + $0x20] sm:$0xff]   ;;  %v497_v17 = vld [vmem:[#allocation8 + $0x28] sm:$0xff]   ;;  %v387_v18 = vld [vmem:[%s767_s2] ss:$0 sm:$0xff] }
  0x4f   :  { %431 = vmatmul.mubr.msk.bf16.vlgmr.msra.gmra.mrb[0].mxu0 %vm98_vm1, %v82_v3  ;;  %v498_v26 = vld [vmem:[#allocation8 + $0x30] sm:$0xff]   ;;  %v499_v27 = vld [vmem:[#allocation8 + $0x38] sm:$0xff]  }
  0x50   :  { %470 = vmatprep.mubr.msk.bf16.mxu0 %vm625_vm0, %v624_v0  ;;  %437 = vmatpush3.bf16.msra.mxu1 %v485_v5  ;;  %v390_v28 = vld [vmem:[%s769_s4] ss:$0 sm:$0xff]  ;;  %s588_s4 = scalar_lea.vmem %s377_s29, 128 }
  0x51   :  { %438 = vmatprep.subr.bf16.mxu1 %v624_v0  ;;  %455 = vmatpush3.bf16.msra.mxu0 %v492_v12  ;;  %v399_v36 = vld [vmem:[%s771_s6] ss:$0 sm:$0xff]  ;;  %p589_p4 = scmp.ne.s32.totalorder %s377_s29, %s588_s4  ;;  %p594_p6 = scmp.lt.s32.totalorder %s588_s4, %s588_s4 }
  0x52   :  { %456 = vmatprep.subr.bf16.mxu0 %v624_v0 }
  0x53   :  { %p595_p7 = por %p594_p6, %p593_p5 }
  0x54   :  { %439 = vmatpush3.bf16.msra.mxu1 %v486_v6 }
  0x55   :  { %440 = vmatprep.subr.bf16.mxu1 %v624_v0  ;;  %457 = vmatpush3.bf16.msra.mxu0 %v493_v13  ;;  %p596_p8 = pnand %p595_p7, %p589_p4 }
  0x56   :  { %458 = vmatprep.subr.bf16.mxu0 %v624_v0 }
  0x58   :  { %441 = vmatpush3.bf16.msra.mxu1 %v487_v7 }
  0x59   :  { %442 = vmatprep.subr.bf16.mxu1 %v624_v0  ;;  %459 = vmatpush3.bf16.msra.mxu0 %v494_v14 }
  0x5a   :  { %460 = vmatprep.subr.bf16.mxu0 %v624_v0 }
  0x5c   :  { %443 = vmatpush3.bf16.msra.mxu1 %v488_v8 }
  0x5d   :  { %444 = vmatprep.subr.bf16.mxu1 %v624_v0  ;;  %461 = vmatpush3.bf16.msra.mxu0 %v495_v15 }
  0x5e   :  { %462 = vmatprep.subr.bf16.mxu0 %v624_v0 }
  0x60   :  { %445 = vmatpush3.bf16.msra.mxu1 %v489_v9 }
  0x61   :  { %446 = vmatprep.subr.bf16.mxu1 %v624_v0  ;;  %463 = vmatpush3.bf16.msra.mxu0 %v496_v16 }
  0x62   :  { %464 = vmatprep.subr.bf16.mxu0 %v624_v0 }
  0x64   :  { %447 = vmatpush3.bf16.msra.mxu1 %v490_v10 }
  0x65   :  { %448 = vmatprep.subr.bf16.mxu1 %v624_v0  ;;  %465 = vmatpush3.bf16.msra.mxu0 %v497_v17 }
  0x66   :  { %466 = vmatprep.subr.bf16.mxu0 %v624_v0 }
  0x68   :  { %449 = vmatpush3.bf16.msra.mxu1 %v491_v11 }
  0x69   :  { %467 = vmatpush3.bf16.msra.mxu0 %v498_v26 }
  0x6a   :  { %468 = vmatprep.subr.bf16.mxu0 %v624_v0 }
  0x6d   :  { %469 = vmatpush3.bf16.msra.mxu0 %v499_v27 }
 0x122   :  { %v136_v19 = vpop.f32.mrb[0].mxu0 }
 0x123   :  { %v137_v20 = vadd.f32 %v387_v18, %v136_v19  ;;  %v432_v21 = vpop.f32.mrb[1].mxu0 }
 0x124   :  { %v139_v22 = vpop.f32.mrb[2].mxu0 }
 0x125   :  { %v142_v23 = vmax.f32 %v137_v20, 0.0  ;;  %v433_v24 = vpop.f32.mrb[3].mxu0 }
 0x127   :  { %v143_v25 = vpack.c.bf16 %v142_v23, %v142_v23 }
 0x129   :  { %451 = vmatmul.mubr.bf16.vlgmr.msra.gmra.mrb[0].mxu1 %v143_v25 }
 0x1fc   :  { %v249_v29 = vpop.f32.mrb[0].mxu1 }
 0x1fd   :  { %v250_v30 = vadd.f32 %v390_v28, %v249_v29  ;;  %v452_v31 = vpop.f32.mrb[1].mxu1 }
 0x1fe   :  { %v252_v32 = vpop.f32.mrb[2].mxu1 }
 0x1ff   :  { %v255_v33 = vmax.f32 %v250_v30, 0.0  ;;  %v453_v34 = vpop.f32.mrb[3].mxu1 }
 0x201   :  { %v256_v35 = vpack.c.bf16 %v255_v33, %v255_v33 }
 0x203   :  { %471 = vmatmul.mubr.bf16.vlgmr.msra.gmra.mrb[4].mxu0 %v256_v35 }
 0x2d6   :  { %v362_v37 = vpop.f32.mrb[4].mxu0 }
 0x2d7   :  { %v363_v38 = vadd.f32 %v399_v36, %v362_v37  ;;  %v472_v39 = vpop.f32.mrb[5].mxu0 }
 0x2d8   :  { %v365_v40 = vpop.f32.mrb[6].mxu0 }
 0x2d9   :  { %v368_v41 = vmax.f32 %v363_v38, 0.0  ;;  %v473_v42 = vpop.f32.mrb[7].mxu0 }
 0x2db   :  { %369 = vst [vmem:[#allocation10] sm:$0xff] %v368_v41 }
 0x2dc   :  { %599 = shalt.err (!%p596_p8)
}
 0x2dd   :  { %s600_s6 = scalar_lea.hbm %s772_s7, 128 }
 0x2de   :  { %p601_p9 = scmp.ne.s32.totalorder %s772_s7, %s600_s6  ;;  %p604_p10 = scmp.lt.u32.totalorder %s600_s6, %s772_s7 }
 0x2e0   :  { %p606_p11 = pnand %p604_p10, %p601_p9 }
 0x2e2   :  { %609 = shalt.err (!%p606_p11)
}
 0x2e3   :  { %379 = dma.vmem_to_hbm [thread:$0]  %s377_s29, 128, %s772_s7, [#allocation4]  }
 0x2e4   :  { %616 = dma.done.wait [#allocation4], 128  }
 0x2e5   :  { %617 = vsyncadd [#allocation4], 4294967168 }
 0x2e6   :  { %383 = vsyncpa [#allocation3], 1 }
 0x2e7   :  { %384 = vsyncpa [#allocation6], 1 }
 0x2e8   :  { %385 = vsyncpa [#allocation9], 1 }
 0x2e9   :  { %386 = vsyncpa [#allocation4], 1 }

</bundles_post_ra>
